<compile_context>
chip_gen: v6e
topology: v6e:2x2x1
jax: 0.10.0
libtpu: 0.0.40
codegen_flags: <defaults>
</compile_context>

<pallas_src>
import functools

import jax
import jax.numpy as jnp
import numpy as np
from jax import lax
from jax.experimental import pallas as pl
from jax.experimental.pallas import tpu as pltpu


def _round_up(x, m):
    return ((x + m - 1) // m) * m


def _vmem_limit_bytes():
    # Lift the conservative scoped-VMEM defaults (16 MiB v5e / 32 MiB v6e,v7x)
    # but keep headroom below physical (128 MiB v5e/v6e, 64 MiB v7x).
    try:
        return int(pltpu.get_tpu_info().vmem_capacity_bytes * 3 // 4)
    except Exception:
        return 48 * 1024 * 1024


def _pick_block_b(batch, s_chunk, hidden, itemsize, budget_bytes):
    """Largest layout-legal batch block whose per-step working set fits budget."""
    # Per batch row per grid step: double-buffered answer chunk (compute dtype)
    # + live f32 intermediates (a_proj, m, p) + accumulator / output rows.
    per_row = (2 * s_chunk * hidden * itemsize
               + 3 * s_chunk * hidden * 4
               + 4 * hidden * 4)
    cap = max(1, budget_bytes // per_row)
    if batch <= cap:
        # Whole batch fits in one step; still split into two sublane-legal
        # blocks when possible so v7x's two TensorCores both get work.
        half = batch // 2
        if batch >= 16 and batch % 2 == 0 and half % 8 == 0:
            return half
        return batch                       # block == full array dim -> legal
    blk = max(8, (cap // 8) * 8)           # multiple of 8 sublanes
    return min(blk, batch)


def _mlp_attention_kernel(q_ref, a_ref, wa_ref, wq_ref, wm_ref, o_ref,
                          m_sc, l_sc, acc_sc, *, seq_len, needs_mask):
    """One (batch block, sequence chunk) step of the online-softmax attention."""
    s_idx = pl.program_id(1)

    @pl.when(s_idx == 0)
    def _init():
        m_sc[...] = jnp.full_like(m_sc, -jnp.inf)
        l_sc[...] = jnp.zeros_like(l_sc)
        acc_sc[...] = jnp.zeros_like(acc_sc)

    a = a_ref[...]                          # (Bb, Sc, H)  compute dtype (bf16)
    q = q_ref[...]                          # (Bb, H)
    block_b, s_chunk, hidden = a.shape

    # x @ W.T with W kept in PyTorch (out, in) layout -> no wrapper transpose.
    nt = (((1,), (1,)), ((), ()))
    a_proj = lax.dot_general(a.reshape(block_b * s_chunk, hidden), wa_ref[...],
                             nt, preferred_element_type=jnp.float32)
    q_proj = lax.dot_general(q, wq_ref[...], nt,
                             preferred_element_type=jnp.float32)

    # m = tanh(linear_answer(answer) + linear_question(question).unsqueeze(-2))
    m = jnp.tanh(a_proj.reshape(block_b, s_chunk, hidden) + q_proj[:, None, :])

    # linear_wm(m): VPU multiply + lane reduction instead of an N=1 MXU matmul.
    logits = jnp.sum(m * wm_ref[...], axis=-1, keepdims=True)   # (Bb, Sc, 1) f32

    if needs_mask:
        pos = s_idx * s_chunk + lax.broadcasted_iota(
            jnp.int32, (block_b, s_chunk, 1), 1)
        valid = pos < seq_len
        logits = jnp.where(valid, logits, -1e30)
        m = jnp.where(valid, m, 0.0)

    # Online softmax over the (innermost, "arbitrary") sequence grid axis.
    chunk_max = jnp.max(logits, axis=1, keepdims=True)          # (Bb, 1, 1)
    m_new = jnp.maximum(m_sc[...], chunk_max)
    alpha = jnp.exp(m_sc[...] - m_new)                          # (Bb, 1, 1)
    p = jnp.exp(logits - m_new)                                 # (Bb, Sc, 1)
    l_sc[...] = alpha * l_sc[...] + jnp.sum(p, axis=1, keepdims=True)
    acc_sc[...] = alpha * acc_sc[...] + jnp.sum(p * m, axis=1, keepdims=True)
    m_sc[...] = m_new

    @pl.when(s_idx == pl.num_programs(1) - 1)
    def _finalize():
        out = acc_sc[...] * pl.reciprocal(l_sc[...], approx=True)  # (Bb, 1, H)
        o_ref[...] = jnp.sum(out, axis=1).astype(o_ref.dtype)      # (Bb, H)


def mlp_attention(question, answer, w_answer, w_question, w_wm, *,
                  compute_dtype=jnp.bfloat16, max_s_chunk=512):
    """question: (B, H); answer: (B, S, H); weights in PyTorch (out, in) layout."""
    B, S, H = answer.shape
    assert question.shape == (B, H)
    assert w_answer.shape == (H, H) and w_question.shape == (H, H)
    assert w_wm.shape == (1, H)
    out_dtype = question.dtype

    vmem_limit = _vmem_limit_bytes()
    itemsize = jnp.dtype(compute_dtype).itemsize
    # Multiples of the packed sublane tile (16 for bf16) keep the in-kernel
    # (Bb,Sc,H)->(Bb*Sc,H) reshape layout-free.
    sub = 16 if itemsize == 2 else 8
    s_pad = _round_up(S, sub)
    s_chunk = min(s_pad, _round_up(max_s_chunk, sub))
    block_b = _pick_block_b(B, s_chunk, H, itemsize, vmem_limit // 2)
    n_b = pl.cdiv(B, block_b)
    n_s = pl.cdiv(s_pad, s_chunk)

    # Only S is ever padded (< `sub` rows); padded positions are masked in the
    # kernel.  The batch axis is never padded (no full-tensor HBM copy).
    if s_pad != S:
        answer = jnp.pad(answer, ((0, 0), (0, s_pad - S), (0, 0)))
    needs_mask = (n_s * s_chunk != S)

    # bf16 matmul operands (f32 accumulation in-kernel); scoring row + all
    # softmax math stay f32.
    q_c = question.astype(compute_dtype)
    a_c = answer.astype(compute_dtype)
    wa_c = w_answer.astype(compute_dtype)
    wq_c = w_question.astype(compute_dtype)
    wm_row = w_wm.astype(jnp.float32)

    kernel = functools.partial(_mlp_attention_kernel,
                               seq_len=S, needs_mask=needs_mask)

    def call(weight_mode):
        def wspec(shape):
            idx = lambda b, s: (0, 0)        # resident weights: never re-fetched
            if weight_mode is None:
                return pl.BlockSpec(shape, idx)
            return pl.BlockSpec(shape, idx, pipeline_mode=weight_mode)

        grid_spec = pltpu.PrefetchScalarGridSpec(
            num_scalar_prefetch=0,
            grid=(n_b, n_s),
            in_specs=[
                pl.BlockSpec((block_b, H), lambda b, s: (b, 0)),              # question
                pl.BlockSpec((block_b, s_chunk, H), lambda b, s: (b, s, 0)),  # answer
                wspec((H, H)),                                                # W_answer
                wspec((H, H)),                                                # W_question
                wspec((1, H)),                                                # w_wm row
            ],
            out_specs=pl.BlockSpec((block_b, H), lambda b, s: (b, 0)),
            scratch_shapes=[
                pltpu.VMEM((block_b, 1, 1), jnp.float32),   # running max
                pltpu.VMEM((block_b, 1, 1), jnp.float32),   # running denominator
                pltpu.VMEM((block_b, 1, H), jnp.float32),   # running weighted sum
            ],
        )
        return pl.pallas_call(
            kernel,
            out_shape=jax.ShapeDtypeStruct((B, H), out_dtype),
            grid_spec=grid_spec,
            compiler_params=pltpu.CompilerParams(
                dimension_semantics=("parallel", "arbitrary"),
                vmem_limit_bytes=vmem_limit),
        )(q_c, a_c, wa_c, wq_c, wm_row)

    # Single-buffer the resident weights when pipeline_mode is supported by the
    # installed jax; otherwise fall back to default double-buffering.
    try:
        return call(pl.Buffered(1))
    except Exception:
        return call(None)


def mlp_attention_ref(question, answer, w_answer, w_question, w_wm,
                      compute_dtype=None):
    """Pure-JAX reference mirroring the PyTorch forward (optionally with the
    same bf16 matmul inputs / f32 accumulation as the kernel)."""
    q, a, wa, wq = question, answer, w_answer, w_question
    if compute_dtype is not None:
        q, a = q.astype(compute_dtype), a.astype(compute_dtype)
        wa, wq = wa.astype(compute_dtype), wq.astype(compute_dtype)
    a_proj = jnp.einsum("bsh,oh->bso", a, wa,
                        preferred_element_type=jnp.float32)
    q_proj = jnp.einsum("bh,oh->bo", q, wq,
                        preferred_element_type=jnp.float32)
    m = jnp.tanh(a_proj + q_proj[:, None, :])
    logits = jnp.einsum("bsh,oh->bso", m, w_wm.astype(jnp.float32))
    attn = jax.nn.softmax(logits, axis=-2)
    return jnp.sum(attn * m, axis=-2).astype(question.dtype)


if __name__ == "__main__":
    # Shapes implied by the module: H = bidire_layer * lstm_hidden_size.
    B, S = 2, 8
    bidire_layer, lstm_hidden_size = 2, 16
    H = bidire_layer * lstm_hidden_size                  # 32

    key = jax.random.PRNGKey(0)
    k_q, k_a, k_wa, k_wq, k_wm = jax.random.split(key, 5)

    question = jax.random.normal(k_q, (B, H), dtype=jnp.float32)
    answer = jax.random.normal(k_a, (B, S, H), dtype=jnp.float32)

    # PyTorch Linear weight layout: (out_features, in_features), bias=False.
    bound = 1.0 / np.sqrt(H)
    w_answer = jax.random.uniform(k_wa, (H, H), jnp.float32, -bound, bound)
    w_question = jax.random.uniform(k_wq, (H, H), jnp.float32, -bound, bound)
    w_wm = jax.random.uniform(k_wm, (1, H), jnp.float32, -bound, bound)

    out = jax.block_until_ready(
        mlp_attention(question, answer, w_answer, w_question, w_wm))

    # Reference with matching bf16 matmul inputs; tolerance covers the
    # approx-reciprocal softmax denominator and transcendental ULP deltas.
    ref = mlp_attention_ref(question, answer, w_answer, w_question, w_wm,
                            compute_dtype=jnp.bfloat16)
    np.testing.assert_allclose(np.asarray(out), np.asarray(ref),
                               rtol=1e-2, atol=1e-2)

    print("KERNEL_OK")
</pallas_src>

<mosaic_0001>
module attributes {stable_mosaic.version = 11 : i64} {
  func.func @_mlp_attention_kernel(%arg0: i32, %arg1: i32, %arg2: memref<2x32xbf16, #tpu.memory_space<vmem>>, %arg3: memref<2x16x32xbf16, #tpu.memory_space<vmem>>, %arg4: memref<32x32xbf16, #tpu.memory_space<vmem>>, %arg5: memref<32x32xbf16, #tpu.memory_space<vmem>>, %arg6: memref<1x32xf32, #tpu.memory_space<vmem>>, %arg7: memref<2x32xf32, #tpu.memory_space<vmem>>, %arg8: memref<2x1x1xf32, #tpu.memory_space<vmem>>, %arg9: memref<2x1x1xf32, #tpu.memory_space<vmem>>, %arg10: memref<2x1x32xf32, #tpu.memory_space<vmem>>) attributes {dimension_semantics = [#tpu.dimension_semantics<parallel>, #tpu.dimension_semantics<arbitrary>], iteration_bounds = array<i64: 1, 1>, scalar_prefetch = 0 : i64, scratch_operands = 3 : i64, tpu.core_type = #tpu.core_type<tc>, window_params = [{transform_indices = @transform_0, window_bounds = array<i64: 2, 32>}, {transform_indices = @transform_1, window_bounds = array<i64: 2, 16, 32>}, {pipeline_mode = #tpu.pipeline_mode<synchronous>, transform_indices = @transform_2, window_bounds = array<i64: 32, 32>}, {pipeline_mode = #tpu.pipeline_mode<synchronous>, transform_indices = @transform_3, window_bounds = array<i64: 32, 32>}, {pipeline_mode = #tpu.pipeline_mode<synchronous>, transform_indices = @transform_4, window_bounds = array<i64: 1, 32>}, {transform_indices = @transform_5, window_bounds = array<i64: 2, 32>}]} {
    %c0_i32 = arith.constant 0 : i32
    %0 = arith.cmpi eq, %arg1, %c0_i32 : i32
    %1 = arith.extui %0 : i1 to i32
    %c0_i32_0 = arith.constant 0 : i32
    %2 = arith.cmpi ne, %1, %c0_i32_0 : i32
    scf.if %2 {
      %cst_41 = arith.constant 0xFF800000 : f32
      %62 = vector.broadcast %cst_41 : f32 to vector<2x1x1xf32>
      %c0_42 = arith.constant 0 : index
      %c0_43 = arith.constant 0 : index
      %c0_44 = arith.constant 0 : index
      %63 = vector.load %arg8[%c0_42, %c0_43, %c0_44] : memref<2x1x1xf32, #tpu.memory_space<vmem>>, vector<2x1x1xf32>
      tpu.vector_store %arg8[%c0_42, %c0_43, %c0_44], %62 {strides = array<i32>} : memref<2x1x1xf32, #tpu.memory_space<vmem>>, vector<2x1x1xf32>,
      %cst_45 = arith.constant 0.000000e+00 : f32
      %64 = vector.broadcast %cst_45 : f32 to vector<2x1x1xf32>
      %c0_46 = arith.constant 0 : index
      %c0_47 = arith.constant 0 : index
      %c0_48 = arith.constant 0 : index
      %65 = vector.load %arg9[%c0_46, %c0_47, %c0_48] : memref<2x1x1xf32, #tpu.memory_space<vmem>>, vector<2x1x1xf32>
      tpu.vector_store %arg9[%c0_46, %c0_47, %c0_48], %64 {strides = array<i32>} : memref<2x1x1xf32, #tpu.memory_space<vmem>>, vector<2x1x1xf32>,
      %cst_49 = arith.constant 0.000000e+00 : f32
      %66 = vector.broadcast %cst_49 : f32 to vector<2x1x32xf32>
      %c0_50 = arith.constant 0 : index
      %c0_51 = arith.constant 0 : index
      %c0_52 = arith.constant 0 : index
      %67 = vector.load %arg10[%c0_50, %c0_51, %c0_52] : memref<2x1x32xf32, #tpu.memory_space<vmem>>, vector<2x1x32xf32>
      tpu.vector_store %arg10[%c0_50, %c0_51, %c0_52], %66 {strides = array<i32>} : memref<2x1x32xf32, #tpu.memory_space<vmem>>, vector<2x1x32xf32>,
    } else {
    }
    %c0 = arith.constant 0 : index
    %c0_1 = arith.constant 0 : index
    %c0_2 = arith.constant 0 : index
    %3 = vector.load %arg3[%c0, %c0_1, %c0_2] : memref<2x16x32xbf16, #tpu.memory_space<vmem>>, vector<2x16x32xbf16>
    %c0_3 = arith.constant 0 : index
    %c0_4 = arith.constant 0 : index
    %4 = vector.load %arg2[%c0_3, %c0_4] : memref<2x32xbf16, #tpu.memory_space<vmem>>, vector<2x32xbf16>
    %5 = vector.shape_cast %3 : vector<2x16x32xbf16> to vector<32x32xbf16>
    %c0_5 = arith.constant 0 : index
    %c0_6 = arith.constant 0 : index
    %6 = vector.load %arg4[%c0_5, %c0_6] : memref<32x32xbf16, #tpu.memory_space<vmem>>, vector<32x32xbf16>
    %cst = arith.constant dense<0.000000e+00> : vector<32x32xf32>
    %7 = tpu.matmul %5, %6, %cst {dimension_numbers = #tpu.dot_dimension_numbers<[1], [1], [0], [0], [0, 0, 1, 0], [], []>} : vector<32x32xbf16>, vector<32x32xbf16>, vector<32x32xf32> -> vector<32x32xf32>
    %c0_7 = arith.constant 0 : index
    %c0_8 = arith.constant 0 : index
    %8 = vector.load %arg5[%c0_7, %c0_8] : memref<32x32xbf16, #tpu.memory_space<vmem>>, vector<32x32xbf16>
    %cst_9 = arith.constant dense<0.000000e+00> : vector<2x32xf32>
    %9 = tpu.matmul %4, %8, %cst_9 {dimension_numbers = #tpu.dot_dimension_numbers<[1], [1], [0], [0], [0, 0, 1, 0], [], []>} : vector<2x32xbf16>, vector<32x32xbf16>, vector<2x32xf32> -> vector<2x32xf32>
    %10 = vector.shape_cast %7 : vector<32x32xf32> to vector<2x16x32xf32>
    %11 = vector.shape_cast %9 : vector<2x32xf32> to vector<2x1x32xf32>
    %12 = vector.broadcast %11 : vector<2x1x32xf32> to vector<2x16x32xf32>
    %13 = arith.addf %10, %12 : vector<2x16x32xf32>
    %14 = math.tanh %13 : vector<2x16x32xf32>
    %c0_10 = arith.constant 0 : index
    %c0_11 = arith.constant 0 : index
    %15 = vector.load %arg6[%c0_10, %c0_11] : memref<1x32xf32, #tpu.memory_space<vmem>>, vector<1x32xf32>
    %16 = vector.shape_cast %15 : vector<1x32xf32> to vector<1x1x32xf32>
    %17 = vector.broadcast %16 : vector<1x1x32xf32> to vector<2x16x32xf32>
    %18 = arith.mulf %14, %17 : vector<2x16x32xf32>
    %cst_12 = arith.constant dense<0.000000e+00> : vector<2x16xf32>
    %19 = vector.multi_reduction <add>, %18, %cst_12 [2] : vector<2x16x32xf32> to vector<2x16xf32>
    %20 = vector.shape_cast %19 : vector<2x16xf32> to vector<2x16x1xf32>
    %c16_i32 = arith.constant 16 : i32
    %21 = arith.muli %arg1, %c16_i32 : i32
    %22 = tpu.iota {dimensions = array<i32: 1>} : vector<2x16x1xi32>
    %23 = vector.broadcast %21 : i32 to vector<2x16x1xi32>
    %24 = arith.addi %23, %22 : vector<2x16x1xi32>
    %c8_i32 = arith.constant 8 : i32
    %25 = vector.broadcast %c8_i32 : i32 to vector<2x16x1xi32>
    %26 = arith.cmpi slt, %24, %25 : vector<2x16x1xi32>
    %cst_13 = arith.constant -1.000000e+30 : f32
    %27 = vector.broadcast %cst_13 : f32 to vector<2x16x1xf32>
    %28 = arith.select %26, %20, %27 : vector<2x16x1xi1>, vector<2x16x1xf32>
    %cst_14 = arith.constant 0.000000e+00 : f32
    %29 = vector.shape_cast %26 : vector<2x16x1xi1> to vector<2x16x1xi1>
    %30 = vector.broadcast %29 : vector<2x16x1xi1> to vector<2x16x32xi1>
    %31 = vector.broadcast %cst_14 : f32 to vector<2x16x32xf32>
    %32 = arith.select %30, %14, %31 : vector<2x16x32xi1>, vector<2x16x32xf32>
    %cst_15 = arith.constant dense<0xFF800000> : vector<2x1xf32>
    %33 = vector.multi_reduction <maximumf>, %28, %cst_15 [1] : vector<2x16x1xf32> to vector<2x1xf32>
    %34 = vector.shape_cast %33 : vector<2x1xf32> to vector<2x1x1xf32>
    %c0_16 = arith.constant 0 : index
    %c0_17 = arith.constant 0 : index
    %c0_18 = arith.constant 0 : index
    %35 = vector.load %arg8[%c0_16, %c0_17, %c0_18] : memref<2x1x1xf32, #tpu.memory_space<vmem>>, vector<2x1x1xf32>
    %36 = arith.maximumf %35, %34 : vector<2x1x1xf32>
    %c0_19 = arith.constant 0 : index
    %c0_20 = arith.constant 0 : index
    %c0_21 = arith.constant 0 : index
    %37 = vector.load %arg8[%c0_19, %c0_20, %c0_21] : memref<2x1x1xf32, #tpu.memory_space<vmem>>, vector<2x1x1xf32>
    %38 = arith.subf %37, %36 : vector<2x1x1xf32>
    %39 = math.exp %38 : vector<2x1x1xf32>
    %40 = vector.broadcast %36 : vector<2x1x1xf32> to vector<2x16x1xf32>
    %41 = arith.subf %28, %40 : vector<2x16x1xf32>
    %42 = math.exp %41 : vector<2x16x1xf32>
    %c0_22 = arith.constant 0 : index
    %c0_23 = arith.constant 0 : index
    %c0_24 = arith.constant 0 : index
    %43 = vector.load %arg9[%c0_22, %c0_23, %c0_24] : memref<2x1x1xf32, #tpu.memory_space<vmem>>, vector<2x1x1xf32>
    %44 = arith.mulf %39, %43 : vector<2x1x1xf32>
    %cst_25 = arith.constant dense<0.000000e+00> : vector<2x1xf32>
    %45 = vector.multi_reduction <add>, %42, %cst_25 [1] : vector<2x16x1xf32> to vector<2x1xf32>
    %46 = vector.shape_cast %45 : vector<2x1xf32> to vector<2x1x1xf32>
    %47 = arith.addf %44, %46 : vector<2x1x1xf32>
    %c0_26 = arith.constant 0 : index
    %c0_27 = arith.constant 0 : index
    %c0_28 = arith.constant 0 : index
    %48 = vector.load %arg9[%c0_26, %c0_27, %c0_28] : memref<2x1x1xf32, #tpu.memory_space<vmem>>, vector<2x1x1xf32>
    tpu.vector_store %arg9[%c0_26, %c0_27, %c0_28], %47 {strides = array<i32>} : memref<2x1x1xf32, #tpu.memory_space<vmem>>, vector<2x1x1xf32>,
    %c0_29 = arith.constant 0 : index
    %c0_30 = arith.constant 0 : index
    %c0_31 = arith.constant 0 : index
    %49 = vector.load %arg10[%c0_29, %c0_30, %c0_31] : memref<2x1x32xf32, #tpu.memory_space<vmem>>, vector<2x1x32xf32>
    %50 = vector.broadcast %39 : vector<2x1x1xf32> to vector<2x1x32xf32>
    %51 = arith.mulf %50, %49 : vector<2x1x32xf32>
    %52 = vector.broadcast %42 : vector<2x16x1xf32> to vector<2x16x32xf32>
    %53 = arith.mulf %52, %32 : vector<2x16x32xf32>
    %cst_32 = arith.constant dense<0.000000e+00> : vector<2x32xf32>
    %54 = vector.multi_reduction <add>, %53, %cst_32 [1] : vector<2x16x32xf32> to vector<2x32xf32>
    %55 = vector.shape_cast %54 : vector<2x32xf32> to vector<2x1x32xf32>
    %56 = arith.addf %51, %55 : vector<2x1x32xf32>
    %c0_33 = arith.constant 0 : index
    %c0_34 = arith.constant 0 : index
    %c0_35 = arith.constant 0 : index
    %57 = vector.load %arg10[%c0_33, %c0_34, %c0_35] : memref<2x1x32xf32, #tpu.memory_space<vmem>>, vector<2x1x32xf32>
    tpu.vector_store %arg10[%c0_33, %c0_34, %c0_35], %56 {strides = array<i32>} : memref<2x1x32xf32, #tpu.memory_space<vmem>>, vector<2x1x32xf32>,
    %c0_36 = arith.constant 0 : index
    %c0_37 = arith.constant 0 : index
    %c0_38 = arith.constant 0 : index
    %58 = vector.load %arg8[%c0_36, %c0_37, %c0_38] : memref<2x1x1xf32, #tpu.memory_space<vmem>>, vector<2x1x1xf32>
    tpu.vector_store %arg8[%c0_36, %c0_37, %c0_38], %36 {strides = array<i32>} : memref<2x1x1xf32, #tpu.memory_space<vmem>>, vector<2x1x1xf32>,
    %c0_i32_39 = arith.constant 0 : i32
    %59 = arith.cmpi eq, %arg1, %c0_i32_39 : i32
    %60 = arith.extui %59 : i1 to i32
    %c0_i32_40 = arith.constant 0 : i32
    %61 = arith.cmpi ne, %60, %c0_i32_40 : i32
    scf.if %61 {
      %c0_41 = arith.constant 0 : index
      %c0_42 = arith.constant 0 : index
      %c0_43 = arith.constant 0 : index
      %62 = vector.load %arg10[%c0_41, %c0_42, %c0_43] : memref<2x1x32xf32, #tpu.memory_space<vmem>>, vector<2x1x32xf32>
      %c0_44 = arith.constant 0 : index
      %c0_45 = arith.constant 0 : index
      %c0_46 = arith.constant 0 : index
      %63 = vector.load %arg9[%c0_44, %c0_45, %c0_46] : memref<2x1x1xf32, #tpu.memory_space<vmem>>, vector<2x1x1xf32>
      %64 = tpu.reciprocal %63 {approx = true} : vector<2x1x1xf32> -> vector<2x1x1xf32>
      %65 = vector.broadcast %64 : vector<2x1x1xf32> to vector<2x1x32xf32>
      %66 = arith.mulf %62, %65 : vector<2x1x32xf32>
      %cst_47 = arith.constant dense<0.000000e+00> : vector<2x32xf32>
      %67 = vector.multi_reduction <add>, %66, %cst_47 [1] : vector<2x1x32xf32> to vector<2x32xf32>
      %c0_48 = arith.constant 0 : index
      %c0_49 = arith.constant 0 : index
      %68 = vector.load %arg7[%c0_48, %c0_49] : memref<2x32xf32, #tpu.memory_space<vmem>>, vector<2x32xf32>
      tpu.vector_store %arg7[%c0_48, %c0_49], %67 {strides = array<i32>} : memref<2x32xf32, #tpu.memory_space<vmem>>, vector<2x32xf32>,
    } else {
    }
    return
  }
  func.func @transform_0(%arg0: i32, %arg1: i32) -> (i32, i32) {
    %c0_i32 = arith.constant 0 : i32
    %c0_i32_0 = arith.constant 0 : i32
    return %arg0, %c0_i32 : i32, i32
  }
  func.func @transform_1(%arg0: i32, %arg1: i32) -> (i32, i32, i32) {
    %c0_i32 = arith.constant 0 : i32
    %c0_i32_0 = arith.constant 0 : i32
    return %arg0, %arg1, %c0_i32 : i32, i32, i32
  }
  func.func @transform_2(%arg0: i32, %arg1: i32) -> (i32, i32) {
    %c0_i32 = arith.constant 0 : i32
    %c0_i32_0 = arith.constant 0 : i32
    %c0_i32_1 = arith.constant 0 : i32
    return %c0_i32, %c0_i32_0 : i32, i32
  }
  func.func @transform_3(%arg0: i32, %arg1: i32) -> (i32, i32) {
    %c0_i32 = arith.constant 0 : i32
    %c0_i32_0 = arith.constant 0 : i32
    %c0_i32_1 = arith.constant 0 : i32
    return %c0_i32, %c0_i32_0 : i32, i32
  }
  func.func @transform_4(%arg0: i32, %arg1: i32) -> (i32, i32) {
    %c0_i32 = arith.constant 0 : i32
    %c0_i32_0 = arith.constant 0 : i32
    %c0_i32_1 = arith.constant 0 : i32
    return %c0_i32, %c0_i32_0 : i32, i32
  }
  func.func @transform_5(%arg0: i32, %arg1: i32) -> (i32, i32) {
    %c0_i32 = arith.constant 0 : i32
    %c0_i32_0 = arith.constant 0 : i32
    return %arg0, %c0_i32 : i32, i32
  }
}

module attributes {stable_mosaic.version = 11 : i64} {
  func.func @_mlp_attention_kernel(%arg0: i32, %arg1: i32, %arg2: memref<2x32xbf16, #tpu.memory_space<vmem>>, %arg3: memref<2x16x32xbf16, #tpu.memory_space<vmem>>, %arg4: memref<32x32xbf16, #tpu.memory_space<vmem>>, %arg5: memref<32x32xbf16, #tpu.memory_space<vmem>>, %arg6: memref<1x32xf32, #tpu.memory_space<vmem>>, %arg7: memref<2x32xf32, #tpu.memory_space<vmem>>, %arg8: memref<2x1x1xf32, #tpu.memory_space<vmem>>, %arg9: memref<2x1x1xf32, #tpu.memory_space<vmem>>, %arg10: memref<2x1x32xf32, #tpu.memory_space<vmem>>) attributes {dimension_semantics = [#tpu.dimension_semantics<parallel>, #tpu.dimension_semantics<arbitrary>], iteration_bounds = array<i64: 1, 1>, scalar_prefetch = 0 : i64, scratch_operands = 3 : i64, tpu.core_type = #tpu.core_type<tc>, window_params = [{transform_indices = @transform_0, window_bounds = array<i64: 2, 32>}, {transform_indices = @transform_1, window_bounds = array<i64: 2, 16, 32>}, {pipeline_mode = #tpu.pipeline_mode<synchronous>, transform_indices = @transform_2, window_bounds = array<i64: 32, 32>}, {pipeline_mode = #tpu.pipeline_mode<synchronous>, transform_indices = @transform_3, window_bounds = array<i64: 32, 32>}, {pipeline_mode = #tpu.pipeline_mode<synchronous>, transform_indices = @transform_4, window_bounds = array<i64: 1, 32>}, {transform_indices = @transform_5, window_bounds = array<i64: 2, 32>}]} {
    %c0_i32 = arith.constant 0 : i32
    %0 = arith.cmpi eq, %arg1, %c0_i32 : i32
    %1 = arith.extui %0 : i1 to i32
    %c0_i32_0 = arith.constant 0 : i32
    %2 = arith.cmpi ne, %1, %c0_i32_0 : i32
    scf.if %2 {
      %cst_41 = arith.constant 0xFF800000 : f32
      %62 = vector.broadcast %cst_41 : f32 to vector<2x1x1xf32>
      %c0_42 = arith.constant 0 : index
      %c0_43 = arith.constant 0 : index
      %c0_44 = arith.constant 0 : index
      %63 = vector.load %arg8[%c0_42, %c0_43, %c0_44] : memref<2x1x1xf32, #tpu.memory_space<vmem>>, vector<2x1x1xf32>
      tpu.vector_store %arg8[%c0_42, %c0_43, %c0_44], %62 {strides = array<i32>} : memref<2x1x1xf32, #tpu.memory_space<vmem>>, vector<2x1x1xf32>,
      %cst_45 = arith.constant 0.000000e+00 : f32
      %64 = vector.broadcast %cst_45 : f32 to vector<2x1x1xf32>
      %c0_46 = arith.constant 0 : index
      %c0_47 = arith.constant 0 : index
      %c0_48 = arith.constant 0 : index
      %65 = vector.load %arg9[%c0_46, %c0_47, %c0_48] : memref<2x1x1xf32, #tpu.memory_space<vmem>>, vector<2x1x1xf32>
      tpu.vector_store %arg9[%c0_46, %c0_47, %c0_48], %64 {strides = array<i32>} : memref<2x1x1xf32, #tpu.memory_space<vmem>>, vector<2x1x1xf32>,
      %cst_49 = arith.constant 0.000000e+00 : f32
      %66 = vector.broadcast %cst_49 : f32 to vector<2x1x32xf32>
      %c0_50 = arith.constant 0 : index
      %c0_51 = arith.constant 0 : index
      %c0_52 = arith.constant 0 : index
      %67 = vector.load %arg10[%c0_50, %c0_51, %c0_52] : memref<2x1x32xf32, #tpu.memory_space<vmem>>, vector<2x1x32xf32>
      tpu.vector_store %arg10[%c0_50, %c0_51, %c0_52], %66 {strides = array<i32>} : memref<2x1x32xf32, #tpu.memory_space<vmem>>, vector<2x1x32xf32>,
    } else {
    }
    %c0 = arith.constant 0 : index
    %c0_1 = arith.constant 0 : index
    %c0_2 = arith.constant 0 : index
    %3 = vector.load %arg3[%c0, %c0_1, %c0_2] : memref<2x16x32xbf16, #tpu.memory_space<vmem>>, vector<2x16x32xbf16>
    %c0_3 = arith.constant 0 : index
    %c0_4 = arith.constant 0 : index
    %4 = vector.load %arg2[%c0_3, %c0_4] : memref<2x32xbf16, #tpu.memory_space<vmem>>, vector<2x32xbf16>
    %5 = vector.shape_cast %3 : vector<2x16x32xbf16> to vector<32x32xbf16>
    %c0_5 = arith.constant 0 : index
    %c0_6 = arith.constant 0 : index
    %6 = vector.load %arg4[%c0_5, %c0_6] : memref<32x32xbf16, #tpu.memory_space<vmem>>, vector<32x32xbf16>
    %cst = arith.constant dense<0.000000e+00> : vector<32x32xf32>
    %7 = tpu.matmul %5, %6, %cst {dimension_numbers = #tpu.dot_dimension_numbers<[1], [1], [0], [0], [0, 0, 1, 0], [], []>} : vector<32x32xbf16>, vector<32x32xbf16>, vector<32x32xf32> -> vector<32x32xf32>
    %c0_7 = arith.constant 0 : index
    %c0_8 = arith.constant 0 : index
    %8 = vector.load %arg5[%c0_7, %c0_8] : memref<32x32xbf16, #tpu.memory_space<vmem>>, vector<32x32xbf16>
    %cst_9 = arith.constant dense<0.000000e+00> : vector<2x32xf32>
    %9 = tpu.matmul %4, %8, %cst_9 {dimension_numbers = #tpu.dot_dimension_numbers<[1], [1], [0], [0], [0, 0, 1, 0], [], []>} : vector<2x32xbf16>, vector<32x32xbf16>, vector<2x32xf32> -> vector<2x32xf32>
    %10 = vector.shape_cast %7 : vector<32x32xf32> to vector<2x16x32xf32>
    %11 = vector.shape_cast %9 : vector<2x32xf32> to vector<2x1x32xf32>
    %12 = vector.broadcast %11 : vector<2x1x32xf32> to vector<2x16x32xf32>
    %13 = arith.addf %10, %12 : vector<2x16x32xf32>
    %14 = math.tanh %13 : vector<2x16x32xf32>
    %c0_10 = arith.constant 0 : index
    %c0_11 = arith.constant 0 : index
    %15 = vector.load %arg6[%c0_10, %c0_11] : memref<1x32xf32, #tpu.memory_space<vmem>>, vector<1x32xf32>
    %16 = vector.shape_cast %15 : vector<1x32xf32> to vector<1x1x32xf32>
    %17 = vector.broadcast %16 : vector<1x1x32xf32> to vector<2x16x32xf32>
    %18 = arith.mulf %14, %17 : vector<2x16x32xf32>
    %cst_12 = arith.constant dense<0.000000e+00> : vector<2x16xf32>
    %19 = vector.multi_reduction <add>, %18, %cst_12 [2] : vector<2x16x32xf32> to vector<2x16xf32>
    %20 = vector.shape_cast %19 : vector<2x16xf32> to vector<2x16x1xf32>
    %c16_i32 = arith.constant 16 : i32
    %21 = arith.muli %arg1, %c16_i32 : i32
    %22 = tpu.iota {dimensions = array<i32: 1>} : vector<2x16x1xi32>
    %23 = vector.broadcast %21 : i32 to vector<2x16x1xi32>
    %24 = arith.addi %23, %22 : vector<2x16x1xi32>
    %c8_i32 = arith.constant 8 : i32
    %25 = vector.broadcast %c8_i32 : i32 to vector<2x16x1xi32>
    %26 = arith.cmpi slt, %24, %25 : vector<2x16x1xi32>
    %cst_13 = arith.constant -1.000000e+30 : f32
    %27 = vector.broadcast %cst_13 : f32 to vector<2x16x1xf32>
    %28 = arith.select %26, %20, %27 : vector<2x16x1xi1>, vector<2x16x1xf32>
    %cst_14 = arith.constant 0.000000e+00 : f32
    %29 = vector.shape_cast %26 : vector<2x16x1xi1> to vector<2x16x1xi1>
    %30 = vector.broadcast %29 : vector<2x16x1xi1> to vector<2x16x32xi1>
    %31 = vector.broadcast %cst_14 : f32 to vector<2x16x32xf32>
    %32 = arith.select %30, %14, %31 : vector<2x16x32xi1>, vector<2x16x32xf32>
    %cst_15 = arith.constant dense<0xFF800000> : vector<2x1xf32>
    %33 = vector.multi_reduction <maximumf>, %28, %cst_15 [1] : vector<2x16x1xf32> to vector<2x1xf32>
    %34 = vector.shape_cast %33 : vector<2x1xf32> to vector<2x1x1xf32>
    %c0_16 = arith.constant 0 : index
    %c0_17 = arith.constant 0 : index
    %c0_18 = arith.constant 0 : index
    %35 = vector.load %arg8[%c0_16, %c0_17, %c0_18] : memref<2x1x1xf32, #tpu.memory_space<vmem>>, vector<2x1x1xf32>
    %36 = arith.maximumf %35, %34 : vector<2x1x1xf32>
    %c0_19 = arith.constant 0 : index
    %c0_20 = arith.constant 0 : index
    %c0_21 = arith.constant 0 : index
    %37 = vector.load %arg8[%c0_19, %c0_20, %c0_21] : memref<2x1x1xf32, #tpu.memory_space<vmem>>, vector<2x1x1xf32>
    %38 = arith.subf %37, %36 : vector<2x1x1xf32>
    %39 = math.exp %38 : vector<2x1x1xf32>
    %40 = vector.broadcast %36 : vector<2x1x1xf32> to vector<2x16x1xf32>
    %41 = arith.subf %28, %40 : vector<2x16x1xf32>
    %42 = math.exp %41 : vector<2x16x1xf32>
    %c0_22 = arith.constant 0 : index
    %c0_23 = arith.constant 0 : index
    %c0_24 = arith.constant 0 : index
    %43 = vector.load %arg9[%c0_22, %c0_23, %c0_24] : memref<2x1x1xf32, #tpu.memory_space<vmem>>, vector<2x1x1xf32>
    %44 = arith.mulf %39, %43 : vector<2x1x1xf32>
    %cst_25 = arith.constant dense<0.000000e+00> : vector<2x1xf32>
    %45 = vector.multi_reduction <add>, %42, %cst_25 [1] : vector<2x16x1xf32> to vector<2x1xf32>
    %46 = vector.shape_cast %45 : vector<2x1xf32> to vector<2x1x1xf32>
    %47 = arith.addf %44, %46 : vector<2x1x1xf32>
    %c0_26 = arith.constant 0 : index
    %c0_27 = arith.constant 0 : index
    %c0_28 = arith.constant 0 : index
    %48 = vector.load %arg9[%c0_26, %c0_27, %c0_28] : memref<2x1x1xf32, #tpu.memory_space<vmem>>, vector<2x1x1xf32>
    tpu.vector_store %arg9[%c0_26, %c0_27, %c0_28], %47 {strides = array<i32>} : memref<2x1x1xf32, #tpu.memory_space<vmem>>, vector<2x1x1xf32>,
    %c0_29 = arith.constant 0 : index
    %c0_30 = arith.constant 0 : index
    %c0_31 = arith.constant 0 : index
    %49 = vector.load %arg10[%c0_29, %c0_30, %c0_31] : memref<2x1x32xf32, #tpu.memory_space<vmem>>, vector<2x1x32xf32>
    %50 = vector.broadcast %39 : vector<2x1x1xf32> to vector<2x1x32xf32>
    %51 = arith.mulf %50, %49 : vector<2x1x32xf32>
    %52 = vector.broadcast %42 : vector<2x16x1xf32> to vector<2x16x32xf32>
    %53 = arith.mulf %52, %32 : vector<2x16x32xf32>
    %cst_32 = arith.constant dense<0.000000e+00> : vector<2x32xf32>
    %54 = vector.multi_reduction <add>, %53, %cst_32 [1] : vector<2x16x32xf32> to vector<2x32xf32>
    %55 = vector.shape_cast %54 : vector<2x32xf32> to vector<2x1x32xf32>
    %56 = arith.addf %51, %55 : vector<2x1x32xf32>
    %c0_33 = arith.constant 0 : index
    %c0_34 = arith.constant 0 : index
    %c0_35 = arith.constant 0 : index
    %57 = vector.load %arg10[%c0_33, %c0_34, %c0_35] : memref<2x1x32xf32, #tpu.memory_space<vmem>>, vector<2x1x32xf32>
    tpu.vector_store %arg10[%c0_33, %c0_34, %c0_35], %56 {strides = array<i32>} : memref<2x1x32xf32, #tpu.memory_space<vmem>>, vector<2x1x32xf32>,
    %c0_36 = arith.constant 0 : index
    %c0_37 = arith.constant 0 : index
    %c0_38 = arith.constant 0 : index
    %58 = vector.load %arg8[%c0_36, %c0_37, %c0_38] : memref<2x1x1xf32, #tpu.memory_space<vmem>>, vector<2x1x1xf32>
    tpu.vector_store %arg8[%c0_36, %c0_37, %c0_38], %36 {strides = array<i32>} : memref<2x1x1xf32, #tpu.memory_space<vmem>>, vector<2x1x1xf32>,
    %c0_i32_39 = arith.constant 0 : i32
    %59 = arith.cmpi eq, %arg1, %c0_i32_39 : i32
    %60 = arith.extui %59 : i1 to i32
    %c0_i32_40 = arith.constant 0 : i32
    %61 = arith.cmpi ne, %60, %c0_i32_40 : i32
    scf.if %61 {
      %c0_41 = arith.constant 0 : index
      %c0_42 = arith.constant 0 : index
      %c0_43 = arith.constant 0 : index
      %62 = vector.load %arg10[%c0_41, %c0_42, %c0_43] : memref<2x1x32xf32, #tpu.memory_space<vmem>>, vector<2x1x32xf32>
      %c0_44 = arith.constant 0 : index
      %c0_45 = arith.constant 0 : index
      %c0_46 = arith.constant 0 : index
      %63 = vector.load %arg9[%c0_44, %c0_45, %c0_46] : memref<2x1x1xf32, #tpu.memory_space<vmem>>, vector<2x1x1xf32>
      %64 = tpu.reciprocal %63 {approx = true} : vector<2x1x1xf32> -> vector<2x1x1xf32>
      %65 = vector.broadcast %64 : vector<2x1x1xf32> to vector<2x1x32xf32>
      %66 = arith.mulf %62, %65 : vector<2x1x32xf32>
      %cst_47 = arith.constant dense<0.000000e+00> : vector<2x32xf32>
      %67 = vector.multi_reduction <add>, %66, %cst_47 [1] : vector<2x1x32xf32> to vector<2x32xf32>
      %c0_48 = arith.constant 0 : index
      %c0_49 = arith.constant 0 : index
      %68 = vector.load %arg7[%c0_48, %c0_49] : memref<2x32xf32, #tpu.memory_space<vmem>>, vector<2x32xf32>
      tpu.vector_store %arg7[%c0_48, %c0_49], %67 {strides = array<i32>} : memref<2x32xf32, #tpu.memory_space<vmem>>, vector<2x32xf32>,
    } else {
    }
    return
  }
  func.func @transform_0(%arg0: i32, %arg1: i32) -> (i32, i32) {
    %c0_i32 = arith.constant 0 : i32
    %c0_i32_0 = arith.constant 0 : i32
    return %arg0, %c0_i32 : i32, i32
  }
  func.func @transform_1(%arg0: i32, %arg1: i32) -> (i32, i32, i32) {
    %c0_i32 = arith.constant 0 : i32
    %c0_i32_0 = arith.constant 0 : i32
    return %arg0, %arg1, %c0_i32 : i32, i32, i32
  }
  func.func @transform_2(%arg0: i32, %arg1: i32) -> (i32, i32) {
    %c0_i32 = arith.constant 0 : i32
    %c0_i32_0 = arith.constant 0 : i32
    %c0_i32_1 = arith.constant 0 : i32
    return %c0_i32, %c0_i32_0 : i32, i32
  }
  func.func @transform_3(%arg0: i32, %arg1: i32) -> (i32, i32) {
    %c0_i32 = arith.constant 0 : i32
    %c0_i32_0 = arith.constant 0 : i32
    %c0_i32_1 = arith.constant 0 : i32
    return %c0_i32, %c0_i32_0 : i32, i32
  }
  func.func @transform_4(%arg0: i32, %arg1: i32) -> (i32, i32) {
    %c0_i32 = arith.constant 0 : i32
    %c0_i32_0 = arith.constant 0 : i32
    %c0_i32_1 = arith.constant 0 : i32
    return %c0_i32, %c0_i32_0 : i32, i32
  }
  func.func @transform_5(%arg0: i32, %arg1: i32) -> (i32, i32) {
    %c0_i32 = arith.constant 0 : i32
    %c0_i32_0 = arith.constant 0 : i32
    return %arg0, %c0_i32 : i32, i32
  }
}

</mosaic_0001>

<bundles_post_ra>
// kernel: tpu_custom_call.1
= control target key start
LH: loop header
LB: loop body
LE: loop exit
PB: predicated region body
PF: predicated region fallthrough
CT: control target
= control target key end

     0   :  { %10 = vsyncpa [#allocation6], 0  ;;  %s856_s0 = inlined_call_operand.hbm [shape: bf16[2,32], index: 0, kind: input, shape index: {}]   ;;  %s857_s1 = inlined_call_operand.hbm [shape: bf16[2,16,32], index: 1, kind: input, shape index: {}]   ;;  %s858_s2 = inlined_call_operand.hbm [shape: bf16[32,32], index: 2, kind: input, shape index: {}]   ;;  %s859_s3 = inlined_call_operand.hbm [shape: bf16[32,32], index: 3, kind: input, shape index: {}]   ;;  %s860_s4 = inlined_call_operand.vmem [shape: f32[1,32], index: 4, kind: input, shape index: {}]   ;;  %s861_s5 = inlined_call_operand.hbm [shape: f32[2,32], index: 5, kind: output, shape index: {}]  }
   0x1   :  { %11 = vsyncpa [#allocation9], 0 }
   0x2   :  { %12 = vsyncpa [#allocation12], 0 }
   0x3   :  { %13 = vsyncpa [#allocation7], 0  ;;  %s724_s18 = smov [#allocation8]  }
   0x4   :  { %s29_s19 = sshll.u32 %s724_s18, 4  ;;  %s30_s19 = int_to_ptr.vmem [resolvable:$true] %s29_s19 }
   0x5   :  { %s624_s20 = scalar_lea.vmem %s30_s19, 256  ;;  %p629_p1 = scmp.lt.s32.totalorder %s30_s19, %s30_s19 }
   0x6   :  { %p625_p0 = scmp.ne.s32.totalorder %s30_s19, %s624_s20  ;;  %p630_p2 = scmp.lt.s32.totalorder %s624_s20, %s624_s20 }
   0x8   :  { %p631_p3 = por %p630_p2, %p629_p1 }
   0xa   :  { %p632_p4 = pnand %p631_p3, %p625_p0 }
   0xc   :  { %635 = shalt.err (!%p632_p4)
}
   0xd   :  { %s725_s21 = smov 64   ;;  %s726_s22 = smov 4  }
   0xe   :  { %35 = dma.hbm_to_vmem [thread:$0]  %s857_s1, 256, %s30_s19, [#allocation9], %s725_s21, %s725_s21, %s726_s22  }
   0xf   :  { %s727_s25 = smov [#allocation5]   ;;  %s728_s27 = smov [#allocation10]  }
  0x10   :  { %s20_s26 = sshll.u32 %s727_s25, 4  ;;  %s41_s28 = sshll.u32 %s728_s27, 4  ;;  %s21_s26 = int_to_ptr.vmem [resolvable:$true] %s20_s26  ;;  %s42_s28 = int_to_ptr.vmem [resolvable:$true] %s41_s28 }
  0x11   :  { %s644_s29 = scalar_lea.vmem %s21_s26, 16  ;;  %s648_s30 = scalar_lea.vmem %s21_s26, 32 }
  0x12   :  { %p645_p5 = scmp.ne.s32.totalorder %s21_s26, %s644_s29  ;;  %p649_p6 = scmp.lt.s32.totalorder %s21_s26, %s21_s26 }
  0x13   :  { %p650_p7 = scmp.lt.s32.totalorder %s648_s30, %s644_s29 }
  0x15   :  { %p651_p8 = por %p650_p7, %p649_p6 }
  0x17   :  { %p652_p9 = pnand %p651_p8, %p645_p5 }
  0x19   :  { %655 = shalt.err (!%p652_p9)
}
  0x1a   :  { %23 = dma.hbm_to_vmem [thread:$0]  %s856_s0, 16, %s21_s26, [#allocation6]  }
  0x1b   :  { %s664_s8 = scalar_lea.vmem %s42_s28, 256  ;;  %p669_p11 = scmp.lt.s32.totalorder %s42_s28, %s42_s28 }
  0x1c   :  { %p665_p10 = scmp.ne.s32.totalorder %s42_s28, %s664_s8  ;;  %p670_p12 = scmp.lt.s32.totalorder %s664_s8, %s664_s8 }
  0x1e   :  { %p671_p13 = por %p670_p12, %p669_p11 }
  0x20   :  { %p672_p0 = pnand %p671_p13, %p665_p10 }
  0x22   :  { %675 = shalt.err (!%p672_p0)
}
  0x23   :  { %47 = dma.hbm_to_vmem [thread:$0]  %s858_s2, 256, %s42_s28, [#allocation9], %s725_s21, %s725_s21, %s726_s22  }
  0x24   :  { %s729_s10 = smov [#allocation11]  }
  0x25   :  { %s53_s11 = sshll.u32 %s729_s10, 4  ;;  %s54_s11 = int_to_ptr.vmem [resolvable:$true] %s53_s11 }
  0x26   :  { %s684_s12 = scalar_lea.vmem %s54_s11, 256  ;;  %p689_p2 = scmp.lt.s32.totalorder %s54_s11, %s54_s11 }
  0x27   :  { %p685_p1 = scmp.ne.s32.totalorder %s54_s11, %s684_s12  ;;  %p690_p3 = scmp.lt.s32.totalorder %s684_s12, %s684_s12 }
  0x29   :  { %p691_p4 = por %p690_p3, %p689_p2 }
  0x2b   :  { %p692_p5 = pnand %p691_p4, %p685_p1 }
  0x2d   :  { %695 = shalt.err (!%p692_p5)
}
  0x2e   :  { %59 = dma.hbm_to_vmem [thread:$0]  %s859_s3, 256, %s54_s11, [#allocation12], %s725_s21, %s725_s21, %s726_s22  }
  0x2f   :  { %716 = dma.done.wait [#allocation6], 16  }
  0x30   :  { %717 = vsyncadd [#allocation6], 4294967280 }
  0x31   :  { %718 = dma.done.wait [#allocation9], 512  }
  0x32   :  { %719 = vsyncadd [#allocation9], 4294966784 }
  0x33   :  { %720 = dma.done.wait [#allocation12], 256  }
  0x34   :  { %721 = vsyncadd [#allocation12], 4294967040  ;;  %vm79_vm0 = vcmask 0   ;;  %v730_v0 = vmov 0.0   ;;  %vm731_vm1 = vmmov 0   ;;  %vm116_vm2 = vcmask 261120  }
  0x35   :  { %82 = vst.msk [vmem:[#allocation3] sm:$0x1] %vm79_vm0, %v730_v0  ;;  %83 = vst.msk [vmem:[#allocation3 + $0x1] sm:$0x1] %vm79_vm0, %v730_v0  ;;  %566 = vmatprep.subr.bf16.mxu1 %v730_v0  ;;  %570 = vmatprep.mubr.msk.bf16.mxu1 %vm731_vm1, %v730_v0  ;;  %v590_v1 = vld [vmem:[#allocation10 + $0x8] sm:$0xff]   ;;  %v591_v2 = vld [vmem:[#allocation11 + $0x8] sm:$0xff]   ;;  %v245_v15 = vlaneseq }
  0x36   :  { %574 = vmatprep.subr.msk.bf16.mxu0 %vm116_vm2, %v590_v1  ;;  %v127_v3 = vsel %vm116_vm2, %v590_v1, 0  ;;  %v592_v4 = vld [vmem:[#allocation10] sm:$0xff]   ;;  %v199_v5 = vsel %vm116_vm2, %v591_v2, 0  ;;  %v594_v6 = vld [vmem:[#allocation8] sm:$0xff]   ;;  %v595_v10 = vld [vmem:[#allocation8 + $0x8] sm:$0xff]   ;;  %v732_v12 = vmov -inf  }
  0x37   :  { %559 = vmatpush3.bf16.xpose.msra.mxu0 %v127_v3  ;;  %567 = vmatpush3.bf16.xpose.msra.mxu1 %v199_v5  ;;  %v593_v7 = vld [vmem:[#allocation11] sm:$0xff]   ;;  %v124_v8 = vsel %vm116_vm2, %v592_v4, 0  ;;  %v91_v11 = vld [vmem:[#allocation5] sm:$0x1]  ;;  %80 = vst.msk [vmem:[#allocation2] sm:$0x1] %vm79_vm0, %v732_v12 }
  0x38   :  { %575 = vmatprep.subr.msk.bf16.mxu0 %vm116_vm2, %v592_v4  ;;  %568 = vmatprep.subr.bf16.mxu1 %v730_v0  ;;  %v196_v9 = vsel %vm116_vm2, %v593_v7, 0  ;;  %81 = vst.msk [vmem:[#allocation2 + $0x1] sm:$0x1] %vm79_vm0, %v732_v12  ;;  %v733_v13 = vmov 1966171168   ;;  %v246_v17 = vshrl.u32 %v245_v15, 7 }
  0x39   :  { %562 = vmatprep.mubr.msk.bf16.mxu0 %vm116_vm2, %v594_v6  ;;  %v243_v14 = vunpack.c.l.s4 %v733_v13  ;;  %v550_v36 = vld [vmem:[%s860_s4] ss:$0 sm:$0xff]  ;;  %v734_v43 = vmov 0   ;;  %vm378_vm3 = vcmask 7168   ;;  %vm84_vm4 = vcmask 253952   ;;  %s735_s4 = smov [#allocation13]  }
  0x3a   :  { %v808_v22 = vsub.s32 0, %v246_v17  ;;  %588 = vset.pattern.permute.xlu1 %v734_v43  ;;  %589 = vset.pattern.permute.xlu0 %v734_v43  ;;  %85 = vst.msk [vmem:[#allocation4] sm:$0x1] %vm84_vm4, %v730_v0  ;;  %86 = vst.msk [vmem:[#allocation4 + $0x1] sm:$0x1] %vm84_vm4, %v730_v0  ;;  %s530_s14 = sshll.u32 %s735_s4, 4  ;;  %s531_s14 = int_to_ptr.vmem [resolvable:$true] %s530_s14 }
  0x3b   :  { %v244_v16 = vunpack.c.0.s8 %v243_v14  ;;  %vm522_vm5 = vcmask 254976   ;;  %s696_s15 = scalar_lea.vmem %s531_s14, 32  ;;  %p701_p7 = scmp.lt.s32.totalorder %s531_s14, %s531_s14 }
  0x3c   :  { %v375_v43 = vld [vmem:[#allocation3 + $0x1] sm:$0x1]  ;;  %p697_p6 = scmp.ne.s32.totalorder %s531_s14, %s696_s15  ;;  %p702_p8 = scmp.lt.s32.totalorder %s696_s15, %s696_s15 }
  0x3d   :  { %v805_v18 = vsub.s32 %v244_v16, %v246_v17 }
  0x3e   :  { %v340_v56 = vld [vmem:[#allocation2] sm:$0x1]  ;;  %p703_p9 = por %p702_p8, %p701_p7 }
  0x3f   :  { %561 = vmatpush3.bf16.xpose.msra.mxu0 %v124_v8  ;;  %569 = vmatpush3.bf16.xpose.msra.mxu1 %v196_v9  ;;  %v341_v61 = vld [vmem:[#allocation2 + $0x1] sm:$0x1] }
  0x40   :  { %p704_p10 = pnand %p703_p9, %p697_p6 }
  0x46   :  { %563 = vmatmul.mubr.msk.bf16.vlgmr.msra.gmra.mxu0 %vm116_vm2, %v595_v10  ;;  %571 = vmatmul.mubr.msk.bf16.vlgmr.msra.gmra.mxu1 %vm116_vm2, %v91_v11 }
 0x106   :  { %v564_v19 = vpop.f32.mrf.mxu0  ;;  %v235_v20 = vpop.f32.mrf.mxu1 }
 0x107   :  { %v248_v21 = vrot.slane %v235_v20, %v805_v18 }
 0x108   :  { %v163_v23 = vpop.f32.mrf.mxu0  ;;  %v572_v24 = vpop.f32.mrf.mxu1 }
 0x109   :  { %v249_v25 = vcombine.high %v248_v21, %v248_v21  ;;  %v256_v26 = vrot.slane %v248_v21, %v805_v18 }
 0x10a   :  { %v565_v27 = vpop.f32.mrf.mxu0  ;;  %v238_v28 = vpop.f32.mrf.mxu1 }
 0x10b   :  { %v263_v29 = vrot.slane %v249_v25, %v805_v18  ;;  %v267_v30 = vrot.slane %v256_v26, %v808_v22 }
 0x10c   :  { %v166_v31 = vpop.f32.mrf.mxu0  ;;  %v573_v32 = vpop.f32.mrf.mxu1 }
 0x10d   :  { %v271_v33 = vrot.slane %v263_v29, %v808_v22  ;;  %v274_v34 = vadd.f32 %v267_v30, %v163_v23 }
 0x10f   :  { %v276_v35 = vadd.f32 %v564_v19, %v271_v33  ;;  %596 = vtanh.f32 %v274_v34  ;;  %v374_v33 = vld [vmem:[#allocation3] sm:$0x1] }
 0x111   :  { %598 = vtanh.f32 %v276_v35 }
 0x11c   :  { %v817_v37 = vpop.eup %596 }
 0x11d   :  { %v289_v38 = vmul.f32 %v817_v37, %v550_v36 }
 0x11e   :  { %v820_v39 = vpop.eup %598 }
 0x11f   :  { %v293_v40 = vsel %vm116_vm2, %v289_v38, 0.0  ;;  %v291_v41 = vmul.f32 %v820_v39, %v550_v36 }
 0x120   :  { %294 = vadd.xlane.f32.xlu0 %v293_v40 }
 0x121   :  { %v299_v42 = vsel %vm116_vm2, %v291_v41, 0.0 }
 0x124   :  { %300 = vadd.xlane.f32.xlu0 %v299_v42 }
 0x1a9   :  { %v295_v44 = vpop.xlane.xlu0 %294 }
 0x1aa   :  { %v326_v45 = vmax.f32 %v295_v44, -1e+30 }
 0x1ac   :  { %v327_v46 = vrot.slane %v326_v45, 4 }
 0x1ad   :  { %v301_v47 = vpop.xlane.xlu0 %300 }
 0x1ae   :  { %v328_v48 = vmax.f32 %v326_v45, %v327_v46  ;;  %v333_v49 = vmax.f32 %v301_v47, -1e+30 }
 0x1b0   :  { %v329_v50 = vrot.slane %v328_v48, 2  ;;  %v334_v51 = vrot.slane %v333_v49, 4 }
 0x1b2   :  { %v330_v52 = vmax.f32 %v328_v48, %v329_v50  ;;  %v335_v53 = vmax.f32 %v333_v49, %v334_v51 }
 0x1b4   :  { %v331_v54 = vrot.slane %v330_v52, 1  ;;  %v336_v55 = vrot.slane %v335_v53, 2 }
 0x1b6   :  { %v332_v57 = vmax.f32 %v330_v52, %v331_v54  ;;  %v337_v58 = vmax.f32 %v335_v53, %v336_v55 }
 0x1b8   :  { %v342_v59 = vmax.f32 %v340_v56, %v332_v57  ;;  %v338_v60 = vrot.slane %v337_v58, 1 }
 0x1ba   :  { %v355_v62 = vrot.slane %v342_v59, %v808_v22  ;;  %471 = vst.msk [vmem:[#allocation2] sm:$0x1] %vm79_vm0, %v342_v59  ;;  %v339_v63 = vmax.f32 %v337_v58, %v338_v60  ;;  %v344_v11 = vsub.f32 %v340_v56, %v342_v59 }
 0x1bc   :  { %v362_v1 = vsub.f32 %v295_v44, %v355_v62  ;;  %v363_v2 = vsub.f32 -1e+30, %v355_v62  ;;  %v343_v3 = vmax.f32 %v341_v61, %v339_v63  ;;  %v346_v12 = vmul.f32 1.442695, %v344_v11 }
 0x1be   :  { %v366_v4 = vmul.f32 1.442695, %v362_v1  ;;  %v368_v5 = vmul.f32 1.442695, %v363_v2  ;;  %472 = vst.msk [vmem:[#allocation2 + $0x1] sm:$0x1] %vm79_vm0, %v343_v3  ;;  %v359_v6 = vrot.slane %v343_v3, %v808_v22  ;;  %v345_v13 = vsub.f32 %v341_v61, %v343_v3 }
 0x1c0   :  { %600 = vpow2.f32 %v366_v4  ;;  %v364_v7 = vsub.f32 %v301_v47, %v359_v6  ;;  %v365_v8 = vsub.f32 -1e+30, %v359_v6  ;;  %v348_v14 = vmul.f32 1.442695, %v345_v13 }
 0x1c1   :  { %602 = vpow2.f32 %v368_v5 }
 0x1c2   :  { %v370_v9 = vmul.f32 1.442695, %v364_v7  ;;  %v372_v10 = vmul.f32 1.442695, %v365_v8 }
 0x1c4   :  { %604 = vpow2.f32 %v370_v9 }
 0x1c5   :  { %606 = vpow2.f32 %v372_v10 }
 0x1c6   :  { %608 = vpow2.f32 %v346_v12 }
 0x1c7   :  { %610 = vpow2.f32 %v348_v14 }
 0x1cd   :  { %v601_v15 = vpop.eup %600 }
 0x1ce   :  { %v603_v16 = vpop.eup %602  ;;  %v379_v17 = vsel %vm378_vm3, %v601_v15, 0.0  ;;  %426 = vperm.xlu1 %588, %v601_v15  }
 0x1cf   :  { %v380_v19 = vsel %vm378_vm3, %v603_v16, 0.0 }
 0x1d0   :  { %v381_v20 = vadd.f32 %v380_v19, %v379_v17  ;;  %v403_v17 = vld [vmem:[#allocation4 + $0x1] sm:$0x1] }
 0x1d1   :  { %v605_v21 = vpop.eup %604 }
 0x1d2   :  { %v382_v23 = vrot.slane %v381_v20, 4  ;;  %431 = vperm.xlu1 %588, %v603_v16   ;;  %v607_v24 = vpop.eup %606  ;;  %v388_v25 = vsel %vm378_vm3, %v605_v21, 0.0  ;;  %436 = vperm.xlu0 %589, %v605_v21  }
 0x1d3   :  { %v389_v27 = vsel %vm378_vm3, %v607_v24, 0.0  ;;  %v609_v32 = vpop.eup %608 }
 0x1d4   :  { %v383_v26 = vadd.f32 %v382_v23, %v381_v20  ;;  %v390_v28 = vadd.f32 %v389_v27, %v388_v25  ;;  %v376_v38 = vmul.f32 %v609_v32, %v374_v33  ;;  %v611_v40 = vpop.eup %610 }
 0x1d5   :  { %v377_v45 = vmul.f32 %v611_v40, %v375_v43 }
 0x1d6   :  { %v384_v29 = vrot.slane %v383_v26, 2  ;;  %441 = vperm.xlu1 %588, %v607_v24   ;;  %v391_v30 = vrot.slane %v390_v28, 4 }
 0x1d8   :  { %v385_v31 = vadd.f32 %v384_v29, %v383_v26  ;;  %v392_v34 = vadd.f32 %v391_v30, %v390_v28 }
 0x1da   :  { %v386_v35 = vrot.slane %v385_v31, 1  ;;  %406 = vperm.xlu1 %588, %v609_v32   ;;  %v393_v36 = vrot.slane %v392_v34, 2 }
 0x1dc   :  { %v387_v0 = vadd.f32 %v386_v35, %v385_v31  ;;  %v394_v41 = vadd.f32 %v393_v36, %v392_v34 }
 0x1de   :  { %v397_v42 = vadd.f32 %v387_v0, %v376_v38  ;;  %415 = vperm.xlu1 %588, %v611_v40   ;;  %v395_v44 = vrot.slane %v394_v41, 1 }
 0x1e0   :  { %400 = vst.msk [vmem:[#allocation3] sm:$0x1] %vm79_vm0, %v397_v42  ;;  %v396_v46 = vadd.f32 %v395_v44, %v394_v41 }
 0x1e2   :  { %v398_v47 = vadd.f32 %v396_v46, %v377_v45 }
 0x1e4   :  { %401 = vst.msk [vmem:[#allocation3 + $0x1] sm:$0x1] %vm79_vm0, %v398_v47 }
 0x1e7   :  { %v478_v48 = vld [vmem:[#allocation3] sm:$0x1] }
 0x1e8   :  { %612 = vrcp.f32 %v478_v48 }
 0x1eb   :  { %v479_v49 = vld [vmem:[#allocation3 + $0x1] sm:$0x1] }
 0x1ec   :  { %614 = vrcp.f32 %v479_v49 }
 0x1f5   :  { %v613_v50 = vpop.eup %612 }
 0x1f6   :  { %484 = vperm.xlu1 %588, %v613_v50  }
 0x1f9   :  { %v615_v51 = vpop.eup %614 }
 0x1fa   :  { %493 = vperm.xlu1 %588, %v615_v51  }
 0x249   :  { %v427_v52 = vpop.permute.xlu1 %426 }
 0x24a   :  { %v444_v53 = vmul.f32 %v817_v37, %v427_v52 }
 0x24c   :  { %v448_v57 = vsel %vm116_vm2, %v444_v53, 0.0 }
 0x24d   :  { %v432_v54 = vpop.permute.xlu1 %431  ;;  %v437_v55 = vpop.permute.xlu0 %436 }
 0x24e   :  { %v445_v56 = vmul.f32 0.0, %v432_v54  ;;  %v446_v58 = vmul.f32 %v820_v39, %v437_v55  ;;  %v402_v39 = vld [vmem:[#allocation4] sm:$0x1] }
 0x250   :  { %v449_v59 = vsel %vm116_vm2, %v445_v56, 0.0  ;;  %v457_v1 = vsel %vm116_vm2, %v446_v58, 0.0 }
 0x251   :  { %v450_v60 = vadd.f32 %v449_v59, %v448_v57  ;;  %v442_v61 = vpop.permute.xlu1 %441 }
 0x252   :  { %v447_v62 = vmul.f32 0.0, %v442_v61 }
 0x253   :  { %v451_v63 = vrot.slane %v450_v60, 4 }
 0x254   :  { %v458_v2 = vsel %vm116_vm2, %v447_v62, 0.0 }
 0x255   :  { %v452_v3 = vadd.f32 %v451_v63, %v450_v60  ;;  %v459_v4 = vadd.f32 %v458_v2, %v457_v1  ;;  %v407_v37 = vpop.permute.xlu1 %406 }
 0x256   :  { %v412_v9 = vrot.slane %v407_v37, %v808_v22 }
 0x257   :  { %v453_v5 = vrot.slane %v452_v3, 2  ;;  %v460_v6 = vrot.slane %v459_v4, 4 }
 0x258   :  { %v422_v15 = vmul.f32 %v412_v9, %v402_v39 }
 0x259   :  { %v454_v7 = vadd.f32 %v453_v5, %v452_v3  ;;  %v461_v8 = vadd.f32 %v460_v6, %v459_v4  ;;  %v416_v10 = vpop.permute.xlu1 %415 }
 0x25a   :  { %v421_v16 = vrot.slane %v416_v10, %v808_v22 }
 0x25b   :  { %v462_v11 = vrot.slane %v461_v8, 2  ;;  %v455_v12 = vrot.slane %v454_v7, 1 }
 0x25c   :  { %v423_v23 = vmul.f32 %v421_v16, %v403_v17 }
 0x25d   :  { %v463_v13 = vadd.f32 %v462_v11, %v461_v8  ;;  %v456_v14 = vadd.f32 %v455_v12, %v454_v7 }
 0x25f   :  { %v466_v19 = vadd.f32 %v456_v14, %v422_v15  ;;  %v464_v20 = vrot.slane %v463_v13, 1 }
 0x261   :  { %469 = vst.msk [vmem:[#allocation4] sm:$0x1] %vm84_vm4, %v466_v19  ;;  %v465_v21 = vadd.f32 %v464_v20, %v463_v13 }
 0x263   :  { %v467_v24 = vadd.f32 %v465_v21, %v423_v23 }
 0x265   :  { %470 = vst.msk [vmem:[#allocation4 + $0x1] sm:$0x1] %vm84_vm4, %v467_v24 }
 0x268   :  { %v476_v29 = vld [vmem:[#allocation4] sm:$0x1] }
 0x26c   :  { %v477_v30 = vld [vmem:[#allocation4 + $0x1] sm:$0x1] }
 0x271   :  { %v485_v25 = vpop.permute.xlu1 %484 }
 0x272   :  { %v490_v26 = vrot.slane %v485_v25, %v808_v22 }
 0x274   :  { %v500_v31 = vmul.f32 %v490_v26, %v476_v29 }
 0x275   :  { %v494_v27 = vpop.permute.xlu1 %493 }
 0x276   :  { %v499_v28 = vrot.slane %v494_v27, %v808_v22 }
 0x278   :  { %v501_v32 = vmul.f32 %v499_v28, %v477_v30 }
 0x27a   :  { %v506_v33 = vcombine.low %v500_v31, %v501_v32 }
 0x27c   :  { %v513_v34 = vrot.slane %v506_v33, %v805_v18 }
 0x27e   :  { %v520_v35 = vrot.slane %v513_v34, %v805_v18 }
 0x280   :  { %523 = vst.msk [vmem:[#allocation13] sm:$0x3] %vm522_vm5, %v520_v35 }
 0x281   :  { %707 = shalt.err (!%p704_p10)
}
 0x282   :  { %533 = dma.vmem_to_hbm [thread:$0]  %s531_s14, 32, %s861_s5, [#allocation7]  }
 0x283   :  { %722 = dma.done.wait [#allocation7], 32  }
 0x284   :  { %723 = vsyncadd [#allocation7], 4294967264 }
 0x285   :  { %537 = vsyncpa [#allocation6], 1 }
 0x286   :  { %538 = vsyncpa [#allocation9], 1 }
 0x287   :  { %539 = vsyncpa [#allocation12], 1 }
 0x288   :  { %540 = vsyncpa [#allocation7], 1 }

// kernel: tpu_custom_call.1
= control target key start
LH: loop header
LB: loop body
LE: loop exit
PB: predicated region body
PF: predicated region fallthrough
CT: control target
= control target key end

     0   :  { %10 = vsyncpa [#allocation6], 0  ;;  %s856_s0 = inlined_call_operand.hbm [shape: bf16[2,32], index: 0, kind: input, shape index: {}]   ;;  %s857_s1 = inlined_call_operand.hbm [shape: bf16[2,16,32], index: 1, kind: input, shape index: {}]   ;;  %s858_s2 = inlined_call_operand.hbm [shape: bf16[32,32], index: 2, kind: input, shape index: {}]   ;;  %s859_s3 = inlined_call_operand.hbm [shape: bf16[32,32], index: 3, kind: input, shape index: {}]   ;;  %s860_s4 = inlined_call_operand.vmem [shape: f32[1,32], index: 4, kind: input, shape index: {}]   ;;  %s861_s5 = inlined_call_operand.hbm [shape: f32[2,32], index: 5, kind: output, shape index: {}]  }
   0x1   :  { %11 = vsyncpa [#allocation9], 0 }
   0x2   :  { %12 = vsyncpa [#allocation12], 0 }
   0x3   :  { %13 = vsyncpa [#allocation7], 0  ;;  %s724_s18 = smov [#allocation8]  }
   0x4   :  { %s29_s19 = sshll.u32 %s724_s18, 4  ;;  %s30_s19 = int_to_ptr.vmem [resolvable:$true] %s29_s19 }
   0x5   :  { %s624_s20 = scalar_lea.vmem %s30_s19, 256  ;;  %p629_p1 = scmp.lt.s32.totalorder %s30_s19, %s30_s19 }
   0x6   :  { %p625_p0 = scmp.ne.s32.totalorder %s30_s19, %s624_s20  ;;  %p630_p2 = scmp.lt.s32.totalorder %s624_s20, %s624_s20 }
   0x8   :  { %p631_p3 = por %p630_p2, %p629_p1 }
   0xa   :  { %p632_p4 = pnand %p631_p3, %p625_p0 }
   0xc   :  { %635 = shalt.err (!%p632_p4)
}
   0xd   :  { %s725_s21 = smov 64   ;;  %s726_s22 = smov 4  }
   0xe   :  { %35 = dma.hbm_to_vmem [thread:$0]  %s857_s1, 256, %s30_s19, [#allocation9], %s725_s21, %s725_s21, %s726_s22  }
   0xf   :  { %s727_s25 = smov [#allocation5]   ;;  %s728_s27 = smov [#allocation10]  }
  0x10   :  { %s20_s26 = sshll.u32 %s727_s25, 4  ;;  %s41_s28 = sshll.u32 %s728_s27, 4  ;;  %s21_s26 = int_to_ptr.vmem [resolvable:$true] %s20_s26  ;;  %s42_s28 = int_to_ptr.vmem [resolvable:$true] %s41_s28 }
  0x11   :  { %s644_s29 = scalar_lea.vmem %s21_s26, 16  ;;  %s648_s30 = scalar_lea.vmem %s21_s26, 32 }
  0x12   :  { %p645_p5 = scmp.ne.s32.totalorder %s21_s26, %s644_s29  ;;  %p649_p6 = scmp.lt.s32.totalorder %s21_s26, %s21_s26 }
  0x13   :  { %p650_p7 = scmp.lt.s32.totalorder %s648_s30, %s644_s29 }
  0x15   :  { %p651_p8 = por %p650_p7, %p649_p6 }
  0x17   :  { %p652_p9 = pnand %p651_p8, %p645_p5 }
  0x19   :  { %655 = shalt.err (!%p652_p9)
}
  0x1a   :  { %23 = dma.hbm_to_vmem [thread:$0]  %s856_s0, 16, %s21_s26, [#allocation6]  }
  0x1b   :  { %s664_s8 = scalar_lea.vmem %s42_s28, 256  ;;  %p669_p11 = scmp.lt.s32.totalorder %s42_s28, %s42_s28 }
  0x1c   :  { %p665_p10 = scmp.ne.s32.totalorder %s42_s28, %s664_s8  ;;  %p670_p12 = scmp.lt.s32.totalorder %s664_s8, %s664_s8 }
  0x1e   :  { %p671_p13 = por %p670_p12, %p669_p11 }
  0x20   :  { %p672_p0 = pnand %p671_p13, %p665_p10 }
  0x22   :  { %675 = shalt.err (!%p672_p0)
}
  0x23   :  { %47 = dma.hbm_to_vmem [thread:$0]  %s858_s2, 256, %s42_s28, [#allocation9], %s725_s21, %s725_s21, %s726_s22  }
  0x24   :  { %s729_s10 = smov [#allocation11]  }
  0x25   :  { %s53_s11 = sshll.u32 %s729_s10, 4  ;;  %s54_s11 = int_to_ptr.vmem [resolvable:$true] %s53_s11 }
  0x26   :  { %s684_s12 = scalar_lea.vmem %s54_s11, 256  ;;  %p689_p2 = scmp.lt.s32.totalorder %s54_s11, %s54_s11 }
  0x27   :  { %p685_p1 = scmp.ne.s32.totalorder %s54_s11, %s684_s12  ;;  %p690_p3 = scmp.lt.s32.totalorder %s684_s12, %s684_s12 }
  0x29   :  { %p691_p4 = por %p690_p3, %p689_p2 }
  0x2b   :  { %p692_p5 = pnand %p691_p4, %p685_p1 }
  0x2d   :  { %695 = shalt.err (!%p692_p5)
}
  0x2e   :  { %59 = dma.hbm_to_vmem [thread:$0]  %s859_s3, 256, %s54_s11, [#allocation12], %s725_s21, %s725_s21, %s726_s22  }
  0x2f   :  { %716 = dma.done.wait [#allocation6], 16  }
  0x30   :  { %717 = vsyncadd [#allocation6], 4294967280 }
  0x31   :  { %718 = dma.done.wait [#allocation9], 512  }
  0x32   :  { %719 = vsyncadd [#allocation9], 4294966784 }
  0x33   :  { %720 = dma.done.wait [#allocation12], 256  }
  0x34   :  { %721 = vsyncadd [#allocation12], 4294967040  ;;  %vm79_vm0 = vcmask 0   ;;  %v730_v0 = vmov 0.0   ;;  %vm731_vm1 = vmmov 0   ;;  %vm116_vm2 = vcmask 261120  }
  0x35   :  { %82 = vst.msk [vmem:[#allocation3] sm:$0x1] %vm79_vm0, %v730_v0  ;;  %83 = vst.msk [vmem:[#allocation3 + $0x1] sm:$0x1] %vm79_vm0, %v730_v0  ;;  %566 = vmatprep.subr.bf16.mxu1 %v730_v0  ;;  %570 = vmatprep.mubr.msk.bf16.mxu1 %vm731_vm1, %v730_v0  ;;  %v590_v1 = vld [vmem:[#allocation10 + $0x8] sm:$0xff]   ;;  %v591_v2 = vld [vmem:[#allocation11 + $0x8] sm:$0xff]   ;;  %v245_v15 = vlaneseq }
  0x36   :  { %574 = vmatprep.subr.msk.bf16.mxu0 %vm116_vm2, %v590_v1  ;;  %v127_v3 = vsel %vm116_vm2, %v590_v1, 0  ;;  %v592_v4 = vld [vmem:[#allocation10] sm:$0xff]   ;;  %v199_v5 = vsel %vm116_vm2, %v591_v2, 0  ;;  %v594_v6 = vld [vmem:[#allocation8] sm:$0xff]   ;;  %v595_v10 = vld [vmem:[#allocation8 + $0x8] sm:$0xff]   ;;  %v732_v12 = vmov -inf  }
  0x37   :  { %559 = vmatpush3.bf16.xpose.msra.mxu0 %v127_v3  ;;  %567 = vmatpush3.bf16.xpose.msra.mxu1 %v199_v5  ;;  %v593_v7 = vld [vmem:[#allocation11] sm:$0xff]   ;;  %v124_v8 = vsel %vm116_vm2, %v592_v4, 0  ;;  %v91_v11 = vld [vmem:[#allocation5] sm:$0x1]  ;;  %80 = vst.msk [vmem:[#allocation2] sm:$0x1] %vm79_vm0, %v732_v12 }
  0x38   :  { %575 = vmatprep.subr.msk.bf16.mxu0 %vm116_vm2, %v592_v4  ;;  %568 = vmatprep.subr.bf16.mxu1 %v730_v0  ;;  %v196_v9 = vsel %vm116_vm2, %v593_v7, 0  ;;  %81 = vst.msk [vmem:[#allocation2 + $0x1] sm:$0x1] %vm79_vm0, %v732_v12  ;;  %v733_v13 = vmov 1966171168   ;;  %v246_v17 = vshrl.u32 %v245_v15, 7 }
  0x39   :  { %562 = vmatprep.mubr.msk.bf16.mxu0 %vm116_vm2, %v594_v6  ;;  %v243_v14 = vunpack.c.l.s4 %v733_v13  ;;  %v550_v36 = vld [vmem:[%s860_s4] ss:$0 sm:$0xff]  ;;  %v734_v43 = vmov 0   ;;  %vm378_vm3 = vcmask 7168   ;;  %vm84_vm4 = vcmask 253952   ;;  %s735_s4 = smov [#allocation13]  }
  0x3a   :  { %v808_v22 = vsub.s32 0, %v246_v17  ;;  %588 = vset.pattern.permute.xlu1 %v734_v43  ;;  %589 = vset.pattern.permute.xlu0 %v734_v43  ;;  %85 = vst.msk [vmem:[#allocation4] sm:$0x1] %vm84_vm4, %v730_v0  ;;  %86 = vst.msk [vmem:[#allocation4 + $0x1] sm:$0x1] %vm84_vm4, %v730_v0  ;;  %s530_s14 = sshll.u32 %s735_s4, 4  ;;  %s531_s14 = int_to_ptr.vmem [resolvable:$true] %s530_s14 }
  0x3b   :  { %v244_v16 = vunpack.c.0.s8 %v243_v14  ;;  %vm522_vm5 = vcmask 254976   ;;  %s696_s15 = scalar_lea.vmem %s531_s14, 32  ;;  %p701_p7 = scmp.lt.s32.totalorder %s531_s14, %s531_s14 }
  0x3c   :  { %v375_v43 = vld [vmem:[#allocation3 + $0x1] sm:$0x1]  ;;  %p697_p6 = scmp.ne.s32.totalorder %s531_s14, %s696_s15  ;;  %p702_p8 = scmp.lt.s32.totalorder %s696_s15, %s696_s15 }
  0x3d   :  { %v805_v18 = vsub.s32 %v244_v16, %v246_v17 }
  0x3e   :  { %v340_v56 = vld [vmem:[#allocation2] sm:$0x1]  ;;  %p703_p9 = por %p702_p8, %p701_p7 }
  0x3f   :  { %561 = vmatpush3.bf16.xpose.msra.mxu0 %v124_v8  ;;  %569 = vmatpush3.bf16.xpose.msra.mxu1 %v196_v9  ;;  %v341_v61 = vld [vmem:[#allocation2 + $0x1] sm:$0x1] }
  0x40   :  { %p704_p10 = pnand %p703_p9, %p697_p6 }
  0x46   :  { %563 = vmatmul.mubr.msk.bf16.vlgmr.msra.gmra.mxu0 %vm116_vm2, %v595_v10  ;;  %571 = vmatmul.mubr.msk.bf16.vlgmr.msra.gmra.mxu1 %vm116_vm2, %v91_v11 }
 0x106   :  { %v564_v19 = vpop.f32.mrf.mxu0  ;;  %v235_v20 = vpop.f32.mrf.mxu1 }
 0x107   :  { %v248_v21 = vrot.slane %v235_v20, %v805_v18 }
 0x108   :  { %v163_v23 = vpop.f32.mrf.mxu0  ;;  %v572_v24 = vpop.f32.mrf.mxu1 }
 0x109   :  { %v249_v25 = vcombine.high %v248_v21, %v248_v21  ;;  %v256_v26 = vrot.slane %v248_v21, %v805_v18 }
 0x10a   :  { %v565_v27 = vpop.f32.mrf.mxu0  ;;  %v238_v28 = vpop.f32.mrf.mxu1 }
 0x10b   :  { %v263_v29 = vrot.slane %v249_v25, %v805_v18  ;;  %v267_v30 = vrot.slane %v256_v26, %v808_v22 }
 0x10c   :  { %v166_v31 = vpop.f32.mrf.mxu0  ;;  %v573_v32 = vpop.f32.mrf.mxu1 }
 0x10d   :  { %v271_v33 = vrot.slane %v263_v29, %v808_v22  ;;  %v274_v34 = vadd.f32 %v267_v30, %v163_v23 }
 0x10f   :  { %v276_v35 = vadd.f32 %v564_v19, %v271_v33  ;;  %596 = vtanh.f32 %v274_v34  ;;  %v374_v33 = vld [vmem:[#allocation3] sm:$0x1] }
 0x111   :  { %598 = vtanh.f32 %v276_v35 }
 0x11c   :  { %v817_v37 = vpop.eup %596 }
 0x11d   :  { %v289_v38 = vmul.f32 %v817_v37, %v550_v36 }
 0x11e   :  { %v820_v39 = vpop.eup %598 }
 0x11f   :  { %v293_v40 = vsel %vm116_vm2, %v289_v38, 0.0  ;;  %v291_v41 = vmul.f32 %v820_v39, %v550_v36 }
 0x120   :  { %294 = vadd.xlane.f32.xlu0 %v293_v40 }
 0x121   :  { %v299_v42 = vsel %vm116_vm2, %v291_v41, 0.0 }
 0x124   :  { %300 = vadd.xlane.f32.xlu0 %v299_v42 }
 0x1a9   :  { %v295_v44 = vpop.xlane.xlu0 %294 }
 0x1aa   :  { %v326_v45 = vmax.f32 %v295_v44, -1e+30 }
 0x1ac   :  { %v327_v46 = vrot.slane %v326_v45, 4 }
 0x1ad   :  { %v301_v47 = vpop.xlane.xlu0 %300 }
 0x1ae   :  { %v328_v48 = vmax.f32 %v326_v45, %v327_v46  ;;  %v333_v49 = vmax.f32 %v301_v47, -1e+30 }
 0x1b0   :  { %v329_v50 = vrot.slane %v328_v48, 2  ;;  %v334_v51 = vrot.slane %v333_v49, 4 }
 0x1b2   :  { %v330_v52 = vmax.f32 %v328_v48, %v329_v50  ;;  %v335_v53 = vmax.f32 %v333_v49, %v334_v51 }
 0x1b4   :  { %v331_v54 = vrot.slane %v330_v52, 1  ;;  %v336_v55 = vrot.slane %v335_v53, 2 }
 0x1b6   :  { %v332_v57 = vmax.f32 %v330_v52, %v331_v54  ;;  %v337_v58 = vmax.f32 %v335_v53, %v336_v55 }
 0x1b8   :  { %v342_v59 = vmax.f32 %v340_v56, %v332_v57  ;;  %v338_v60 = vrot.slane %v337_v58, 1 }
 0x1ba   :  { %v355_v62 = vrot.slane %v342_v59, %v808_v22  ;;  %471 = vst.msk [vmem:[#allocation2] sm:$0x1] %vm79_vm0, %v342_v59  ;;  %v339_v63 = vmax.f32 %v337_v58, %v338_v60  ;;  %v344_v11 = vsub.f32 %v340_v56, %v342_v59 }
 0x1bc   :  { %v362_v1 = vsub.f32 %v295_v44, %v355_v62  ;;  %v363_v2 = vsub.f32 -1e+30, %v355_v62  ;;  %v343_v3 = vmax.f32 %v341_v61, %v339_v63  ;;  %v346_v12 = vmul.f32 1.442695, %v344_v11 }
 0x1be   :  { %v366_v4 = vmul.f32 1.442695, %v362_v1  ;;  %v368_v5 = vmul.f32 1.442695, %v363_v2  ;;  %472 = vst.msk [vmem:[#allocation2 + $0x1] sm:$0x1] %vm79_vm0, %v343_v3  ;;  %v359_v6 = vrot.slane %v343_v3, %v808_v22  ;;  %v345_v13 = vsub.f32 %v341_v61, %v343_v3 }
 0x1c0   :  { %600 = vpow2.f32 %v366_v4  ;;  %v364_v7 = vsub.f32 %v301_v47, %v359_v6  ;;  %v365_v8 = vsub.f32 -1e+30, %v359_v6  ;;  %v348_v14 = vmul.f32 1.442695, %v345_v13 }
 0x1c1   :  { %602 = vpow2.f32 %v368_v5 }
 0x1c2   :  { %v370_v9 = vmul.f32 1.442695, %v364_v7  ;;  %v372_v10 = vmul.f32 1.442695, %v365_v8 }
 0x1c4   :  { %604 = vpow2.f32 %v370_v9 }
 0x1c5   :  { %606 = vpow2.f32 %v372_v10 }
 0x1c6   :  { %608 = vpow2.f32 %v346_v12 }
 0x1c7   :  { %610 = vpow2.f32 %v348_v14 }
 0x1cd   :  { %v601_v15 = vpop.eup %600 }
 0x1ce   :  { %v603_v16 = vpop.eup %602  ;;  %v379_v17 = vsel %vm378_vm3, %v601_v15, 0.0  ;;  %426 = vperm.xlu1 %588, %v601_v15  }
 0x1cf   :  { %v380_v19 = vsel %vm378_vm3, %v603_v16, 0.0 }
 0x1d0   :  { %v381_v20 = vadd.f32 %v380_v19, %v379_v17  ;;  %v403_v17 = vld [vmem:[#allocation4 + $0x1] sm:$0x1] }
 0x1d1   :  { %v605_v21 = vpop.eup %604 }
 0x1d2   :  { %v382_v23 = vrot.slane %v381_v20, 4  ;;  %431 = vperm.xlu1 %588, %v603_v16   ;;  %v607_v24 = vpop.eup %606  ;;  %v388_v25 = vsel %vm378_vm3, %v605_v21, 0.0  ;;  %436 = vperm.xlu0 %589, %v605_v21  }
 0x1d3   :  { %v389_v27 = vsel %vm378_vm3, %v607_v24, 0.0  ;;  %v609_v32 = vpop.eup %608 }
 0x1d4   :  { %v383_v26 = vadd.f32 %v382_v23, %v381_v20  ;;  %v390_v28 = vadd.f32 %v389_v27, %v388_v25  ;;  %v376_v38 = vmul.f32 %v609_v32, %v374_v33  ;;  %v611_v40 = vpop.eup %610 }
 0x1d5   :  { %v377_v45 = vmul.f32 %v611_v40, %v375_v43 }
 0x1d6   :  { %v384_v29 = vrot.slane %v383_v26, 2  ;;  %441 = vperm.xlu1 %588, %v607_v24   ;;  %v391_v30 = vrot.slane %v390_v28, 4 }
 0x1d8   :  { %v385_v31 = vadd.f32 %v384_v29, %v383_v26  ;;  %v392_v34 = vadd.f32 %v391_v30, %v390_v28 }
 0x1da   :  { %v386_v35 = vrot.slane %v385_v31, 1  ;;  %406 = vperm.xlu1 %588, %v609_v32   ;;  %v393_v36 = vrot.slane %v392_v34, 2 }
 0x1dc   :  { %v387_v0 = vadd.f32 %v386_v35, %v385_v31  ;;  %v394_v41 = vadd.f32 %v393_v36, %v392_v34 }
 0x1de   :  { %v397_v42 = vadd.f32 %v387_v0, %v376_v38  ;;  %415 = vperm.xlu1 %588, %v611_v40   ;;  %v395_v44 = vrot.slane %v394_v41, 1 }
 0x1e0   :  { %400 = vst.msk [vmem:[#allocation3] sm:$0x1] %vm79_vm0, %v397_v42  ;;  %v396_v46 = vadd.f32 %v395_v44, %v394_v41 }
 0x1e2   :  { %v398_v47 = vadd.f32 %v396_v46, %v377_v45 }
 0x1e4   :  { %401 = vst.msk [vmem:[#allocation3 + $0x1] sm:$0x1] %vm79_vm0, %v398_v47 }
 0x1e7   :  { %v478_v48 = vld [vmem:[#allocation3] sm:$0x1] }
 0x1e8   :  { %612 = vrcp.f32 %v478_v48 }
 0x1eb   :  { %v479_v49 = vld [vmem:[#allocation3 + $0x1] sm:$0x1] }
 0x1ec   :  { %614 = vrcp.f32 %v479_v49 }
 0x1f5   :  { %v613_v50 = vpop.eup %612 }
 0x1f6   :  { %484 = vperm.xlu1 %588, %v613_v50  }
 0x1f9   :  { %v615_v51 = vpop.eup %614 }
 0x1fa   :  { %493 = vperm.xlu1 %588, %v615_v51  }
 0x249   :  { %v427_v52 = vpop.permute.xlu1 %426 }
 0x24a   :  { %v444_v53 = vmul.f32 %v817_v37, %v427_v52 }
 0x24c   :  { %v448_v57 = vsel %vm116_vm2, %v444_v53, 0.0 }
 0x24d   :  { %v432_v54 = vpop.permute.xlu1 %431  ;;  %v437_v55 = vpop.permute.xlu0 %436 }
 0x24e   :  { %v445_v56 = vmul.f32 0.0, %v432_v54  ;;  %v446_v58 = vmul.f32 %v820_v39, %v437_v55  ;;  %v402_v39 = vld [vmem:[#allocation4] sm:$0x1] }
 0x250   :  { %v449_v59 = vsel %vm116_vm2, %v445_v56, 0.0  ;;  %v457_v1 = vsel %vm116_vm2, %v446_v58, 0.0 }
 0x251   :  { %v450_v60 = vadd.f32 %v449_v59, %v448_v57  ;;  %v442_v61 = vpop.permute.xlu1 %441 }
 0x252   :  { %v447_v62 = vmul.f32 0.0, %v442_v61 }
 0x253   :  { %v451_v63 = vrot.slane %v450_v60, 4 }
 0x254   :  { %v458_v2 = vsel %vm116_vm2, %v447_v62, 0.0 }
 0x255   :  { %v452_v3 = vadd.f32 %v451_v63, %v450_v60  ;;  %v459_v4 = vadd.f32 %v458_v2, %v457_v1  ;;  %v407_v37 = vpop.permute.xlu1 %406 }
 0x256   :  { %v412_v9 = vrot.slane %v407_v37, %v808_v22 }
 0x257   :  { %v453_v5 = vrot.slane %v452_v3, 2  ;;  %v460_v6 = vrot.slane %v459_v4, 4 }
 0x258   :  { %v422_v15 = vmul.f32 %v412_v9, %v402_v39 }
 0x259   :  { %v454_v7 = vadd.f32 %v453_v5, %v452_v3  ;;  %v461_v8 = vadd.f32 %v460_v6, %v459_v4  ;;  %v416_v10 = vpop.permute.xlu1 %415 }
 0x25a   :  { %v421_v16 = vrot.slane %v416_v10, %v808_v22 }
 0x25b   :  { %v462_v11 = vrot.slane %v461_v8, 2  ;;  %v455_v12 = vrot.slane %v454_v7, 1 }
 0x25c   :  { %v423_v23 = vmul.f32 %v421_v16, %v403_v17 }
 0x25d   :  { %v463_v13 = vadd.f32 %v462_v11, %v461_v8  ;;  %v456_v14 = vadd.f32 %v455_v12, %v454_v7 }
 0x25f   :  { %v466_v19 = vadd.f32 %v456_v14, %v422_v15  ;;  %v464_v20 = vrot.slane %v463_v13, 1 }
 0x261   :  { %469 = vst.msk [vmem:[#allocation4] sm:$0x1] %vm84_vm4, %v466_v19  ;;  %v465_v21 = vadd.f32 %v464_v20, %v463_v13 }
 0x263   :  { %v467_v24 = vadd.f32 %v465_v21, %v423_v23 }
 0x265   :  { %470 = vst.msk [vmem:[#allocation4 + $0x1] sm:$0x1] %vm84_vm4, %v467_v24 }
 0x268   :  { %v476_v29 = vld [vmem:[#allocation4] sm:$0x1] }
 0x26c   :  { %v477_v30 = vld [vmem:[#allocation4 + $0x1] sm:$0x1] }
 0x271   :  { %v485_v25 = vpop.permute.xlu1 %484 }
 0x272   :  { %v490_v26 = vrot.slane %v485_v25, %v808_v22 }
 0x274   :  { %v500_v31 = vmul.f32 %v490_v26, %v476_v29 }
 0x275   :  { %v494_v27 = vpop.permute.xlu1 %493 }
 0x276   :  { %v499_v28 = vrot.slane %v494_v27, %v808_v22 }
 0x278   :  { %v501_v32 = vmul.f32 %v499_v28, %v477_v30 }
 0x27a   :  { %v506_v33 = vcombine.low %v500_v31, %v501_v32 }
 0x27c   :  { %v513_v34 = vrot.slane %v506_v33, %v805_v18 }
 0x27e   :  { %v520_v35 = vrot.slane %v513_v34, %v805_v18 }
 0x280   :  { %523 = vst.msk [vmem:[#allocation13] sm:$0x3] %vm522_vm5, %v520_v35 }
 0x281   :  { %707 = shalt.err (!%p704_p10)
}
 0x282   :  { %533 = dma.vmem_to_hbm [thread:$0]  %s531_s14, 32, %s861_s5, [#allocation7]  }
 0x283   :  { %722 = dma.done.wait [#allocation7], 32  }
 0x284   :  { %723 = vsyncadd [#allocation7], 4294967264 }
 0x285   :  { %537 = vsyncpa [#allocation6], 1 }
 0x286   :  { %538 = vsyncpa [#allocation9], 1 }
 0x287   :  { %539 = vsyncpa [#allocation12], 1 }
 0x288   :  { %540 = vsyncpa [#allocation7], 1 }

</bundles_post_ra>
